<compile_context>
chip_gen: v5e
topology: v5e:2x2
jax: 0.10.0
libtpu: 0.0.40
codegen_flags: <defaults>
</compile_context>

<pallas_src>
from functools import partial

import jax
import jax.numpy as jnp
from jax.experimental import pallas as pl
from jax.experimental.pallas import tpu as pltpu

DIM_FROM = 3
DIM_TO = 2

_LANES = 128
_SUBLANES = 8


def _round_up(n, m):
    return ((n + m - 1) // m) * m


def _hash_u32(v):
    """lowbias32-style uint32 hash, plain jnp ops (works in Mosaic and interpret)."""
    v = v ^ (v >> jnp.uint32(16))
    v = v * jnp.uint32(0x7FEB352D)
    v = v ^ (v >> jnp.uint32(15))
    v = v * jnp.uint32(0x846CA68B)
    v = v ^ (v >> jnp.uint32(16))
    return v


def _keep_mask(key_u32, seed_u32, keep_prob):
    """Bernoulli(keep_prob) mask from counter `key` + seed (signed i32 compare)."""
    h = _hash_u32(key_u32 ^ (seed_u32 * jnp.uint32(0x9E3779B1) + jnp.uint32(0x85EBCA77)))
    thr = jnp.int32(min(int(keep_prob * 2147483648.0), 2147483647))
    return (h >> jnp.uint32(1)).astype(jnp.int32) < thr


def _linear1_dropout_relu_kernel(seed_ref, xt_ref, w_ref, b_ref, o_ref, *,
                                 apply_dropout, keep_prob, block_rows):
    """One batch tile.

    seed_ref: SMEM (1,)  uint32
    xt_ref  : VMEM (DIM_FROM, block_rows, 128) f32  -- batch on (sublane, lane)
    w_ref   : SMEM (DIM_TO, DIM_FROM) f32           -- 1/keep_prob already folded in
    b_ref   : SMEM (DIM_TO,) f32
    o_ref   : VMEM (DIM_TO, block_rows, 128) f32
    """
    shape = (block_rows, _LANES)

    if apply_dropout:
        row0 = pl.program_id(0) * block_rows
        rows = jax.lax.broadcasted_iota(jnp.int32, shape, 0) + row0
        lanes = jax.lax.broadcasted_iota(jnp.int32, shape, 1)
        # Global batch index of each element -> mask is independent of tiling.
        pos = (rows * _LANES + lanes).astype(jnp.uint32)
        seed_u = seed_ref[0]

    x_rows = []
    for k in range(DIM_FROM):
        xk = xt_ref[k]                                        # (block_rows, 128) view load
        if apply_dropout:
            key = pos * jnp.uint32(DIM_FROM) + jnp.uint32(k)
            keep = _keep_mask(key, seed_u, keep_prob)
            xk = jnp.where(keep, xk, jnp.float32(0.0))        # scale folded into W
        x_rows.append(xk)

    for j in range(DIM_TO):
        acc = x_rows[0] * w_ref[j, 0]
        for k in range(1, DIM_FROM):
            acc = acc + x_rows[k] * w_ref[j, k]
        acc = acc + b_ref[j]
        o_ref[j] = jnp.maximum(acc, jnp.float32(0.0))         # dense unmasked store


@partial(jax.jit, static_argnames=("rate", "training", "block_rows"))
def linear1_dropout_relu(x, weight, bias, seed=0, *, rate=0.5, training=True,
                         block_rows=4096):
    """y = relu(dropout(x, rate) @ weight.T + bias); x: (B, DIM_FROM) float32."""
    B, d_in = x.shape
    assert d_in == DIM_FROM and weight.shape == (DIM_TO, DIM_FROM)

    apply_dropout = bool(training) and float(rate) > 0.0
    keep_prob = 1.0 - float(rate)
    if apply_dropout and keep_prob <= 0.0:                    # rate == 1: all dropped
        out = jnp.maximum(bias.astype(jnp.float32), 0.0)
        return jnp.broadcast_to(out, (B, DIM_TO)).astype(x.dtype)

    # Fold 1/keep_prob dropout scale into the tiny weight matrix (6 scalars, once).
    w = weight.astype(jnp.float32)
    if apply_dropout:
        w = w / jnp.float32(keep_prob)
    b = bias.astype(jnp.float32)

    # Tiling: batch -> (sublane rows, 128 lanes); block = (DIM_FROM, br, 128).
    n_rows = pl.cdiv(B, _LANES)
    br = min(int(block_rows), _round_up(n_rows, _SUBLANES))
    br = max(_SUBLANES, _round_up(br, _SUBLANES))
    rows_p = _round_up(n_rows, br)
    Bp = rows_p * _LANES
    grid = (rows_p // br,)

    # Layout plumbing fuses under jit: transpose + pad + reshape in one pass.
    xt = jnp.pad(x.T.astype(jnp.float32), ((0, 0), (0, Bp - B)))
    xt = xt.reshape(DIM_FROM, rows_p, _LANES)

    seed_arr = jnp.asarray(seed, dtype=jnp.uint32).reshape((1,))

    # Double-buffered input+output tiles; keep at least the scoped default.
    tile_bytes = (DIM_FROM + DIM_TO) * br * _LANES * 4
    vmem_limit = min(max(32 << 20, int(2.5 * tile_bytes) + (2 << 20)), 100 << 20)

    out3 = pl.pallas_call(
        partial(_linear1_dropout_relu_kernel, apply_dropout=apply_dropout,
                keep_prob=keep_prob, block_rows=br),
        out_shape=jax.ShapeDtypeStruct((DIM_TO, rows_p, _LANES), jnp.float32),
        grid=grid,
        in_specs=[
            pl.BlockSpec(memory_space=pltpu.MemorySpace.SMEM),          # seed
            pl.BlockSpec((DIM_FROM, br, _LANES), lambda i: (0, i, 0)),  # x tile
            pl.BlockSpec(memory_space=pltpu.MemorySpace.SMEM),          # weight
            pl.BlockSpec(memory_space=pltpu.MemorySpace.SMEM),          # bias
        ],
        out_specs=pl.BlockSpec((DIM_TO, br, _LANES), lambda i: (0, i, 0)),
        compiler_params=pltpu.CompilerParams(
            dimension_semantics=("parallel",),
            vmem_limit_bytes=vmem_limit),
    )(seed_arr, xt, w, b)

    return out3.reshape(DIM_TO, Bp)[:, :B].T.astype(x.dtype)


def _reference(x, weight, bias, *, rate, training, seed):
    """Pure-JAX reference using the same counter-based dropout mask."""
    xf = x.astype(jnp.float32)
    if training and rate > 0.0:
        keep_prob = 1.0 - float(rate)
        b_idx = jnp.arange(x.shape[0], dtype=jnp.int32)[:, None]
        k_idx = jnp.arange(DIM_FROM, dtype=jnp.int32)[None, :]
        key = (b_idx * DIM_FROM + k_idx).astype(jnp.uint32)
        keep = _keep_mask(key, jnp.uint32(seed), keep_prob)
        xf = jnp.where(keep, xf, 0.0) / jnp.float32(keep_prob)
    wf = weight.astype(jnp.float32)
    bf = bias.astype(jnp.float32)
    return jnp.maximum(xf @ wf.T + bf, 0.0)


if __name__ == "__main__":
    key = jax.random.PRNGKey(0)
    kx, kw, kb, kx2 = jax.random.split(key, 4)

    # torch.nn.Linear default init: U(-1/sqrt(in_features), 1/sqrt(in_features))
    bound = 1.0 / (DIM_FROM ** 0.5)
    weight = jax.random.uniform(kw, (DIM_TO, DIM_FROM), jnp.float32, -bound, bound)
    bias = jax.random.uniform(kb, (DIM_TO,), jnp.float32, -bound, bound)

    rate = 0.25
    B = 300                                   # non-multiple of 128: exercises padding
    x = jax.random.normal(kx, (B, DIM_FROM), jnp.float32)

    # Eval mode (dropout = identity).
    out_eval = jax.block_until_ready(
        linear1_dropout_relu(x, weight, bias, rate=rate, training=False))
    ref_eval = _reference(x, weight, bias, rate=rate, training=False, seed=0)
    assert out_eval.shape == (B, DIM_TO)
    assert jnp.allclose(out_eval, ref_eval, atol=1e-5, rtol=1e-5), "eval mismatch"

    # Training mode (dropout active), single grid step.
    out_tr = jax.block_until_ready(
        linear1_dropout_relu(x, weight, bias, seed=42, rate=rate, training=True))
    ref_tr = _reference(x, weight, bias, rate=rate, training=True, seed=42)
    assert jnp.allclose(out_tr, ref_tr, atol=1e-5, rtol=1e-5), "train mismatch"
    assert bool(jnp.all(out_tr >= 0.0))

    # Training mode, multi-step grid (block_rows=8 -> 2 steps at B=2000); the
    # counter-based mask is tiling-invariant so the same reference applies.
    B2 = 2000
    x2 = jax.random.normal(kx2, (B2, DIM_FROM), jnp.float32)
    out2 = jax.block_until_ready(
        linear1_dropout_relu(x2, weight, bias, seed=7, rate=rate, training=True,
                             block_rows=8))
    ref2 = _reference(x2, weight, bias, rate=rate, training=True, seed=7)
    assert out2.shape == (B2, DIM_TO)
    assert jnp.allclose(out2, ref2, atol=1e-5, rtol=1e-5), "multi-tile mismatch"

    print("KERNEL_OK")
</pallas_src>

<mosaic_0001>
module attributes {stable_mosaic.version = 11 : i64} {
  func.func @_linear1_dropout_relu_kernel(%arg0: i32, %arg1: memref<1xi32, #tpu.memory_space<smem>>, %arg2: memref<3x8x128xf32, #tpu.memory_space<vmem>>, %arg3: memref<2x3xf32, #tpu.memory_space<smem>>, %arg4: memref<2xf32, #tpu.memory_space<smem>>, %arg5: memref<2x8x128xf32, #tpu.memory_space<vmem>>) attributes {dimension_semantics = [#tpu.dimension_semantics<parallel>], iteration_bounds = array<i64: 1>, scalar_prefetch = 0 : i64, scratch_operands = 0 : i64, tpu.core_type = #tpu.core_type<tc>, window_params = [{transform_indices = @transform_0, window_bounds = array<i64: 1>}, {transform_indices = @transform_1, window_bounds = array<i64: 3, 8, 128>}, {transform_indices = @transform_2, window_bounds = array<i64: 2, 3>}, {transform_indices = @transform_3, window_bounds = array<i64: 2>}, {transform_indices = @transform_4, window_bounds = array<i64: 2, 8, 128>}]} {
    %c0 = arith.constant 0 : index
    %c0_0 = arith.constant 0 : index
    %c0_1 = arith.constant 0 : index
    %0 = vector.load %arg2[%c0, %c0_0, %c0_1] : memref<3x8x128xf32, #tpu.memory_space<vmem>>, vector<1x8x128xf32>
    %1 = vector.shape_cast %0 : vector<1x8x128xf32> to vector<8x128xf32>
    %c1 = arith.constant 1 : index
    %c0_2 = arith.constant 0 : index
    %c0_3 = arith.constant 0 : index
    %2 = vector.load %arg2[%c1, %c0_2, %c0_3] : memref<3x8x128xf32, #tpu.memory_space<vmem>>, vector<1x8x128xf32>
    %3 = vector.shape_cast %2 : vector<1x8x128xf32> to vector<8x128xf32>
    %c2 = arith.constant 2 : index
    %c0_4 = arith.constant 0 : index
    %c0_5 = arith.constant 0 : index
    %4 = vector.load %arg2[%c2, %c0_4, %c0_5] : memref<3x8x128xf32, #tpu.memory_space<vmem>>, vector<1x8x128xf32>
    %5 = vector.shape_cast %4 : vector<1x8x128xf32> to vector<8x128xf32>
    %c0_6 = arith.constant 0 : index
    %c0_7 = arith.constant 0 : index
    %6 = memref.load %arg3[%c0_6, %c0_7] : memref<2x3xf32, #tpu.memory_space<smem>>
    %7 = vector.broadcast %6 : f32 to vector<8x128xf32>
    %8 = arith.mulf %1, %7 : vector<8x128xf32>
    %c0_8 = arith.constant 0 : index
    %c1_9 = arith.constant 1 : index
    %9 = memref.load %arg3[%c0_8, %c1_9] : memref<2x3xf32, #tpu.memory_space<smem>>
    %10 = vector.broadcast %9 : f32 to vector<8x128xf32>
    %11 = arith.mulf %3, %10 : vector<8x128xf32>
    %12 = arith.addf %8, %11 : vector<8x128xf32>
    %c0_10 = arith.constant 0 : index
    %c2_11 = arith.constant 2 : index
    %13 = memref.load %arg3[%c0_10, %c2_11] : memref<2x3xf32, #tpu.memory_space<smem>>
    %14 = vector.broadcast %13 : f32 to vector<8x128xf32>
    %15 = arith.mulf %5, %14 : vector<8x128xf32>
    %16 = arith.addf %12, %15 : vector<8x128xf32>
    %c0_12 = arith.constant 0 : index
    %17 = memref.load %arg4[%c0_12] : memref<2xf32, #tpu.memory_space<smem>>
    %18 = vector.broadcast %17 : f32 to vector<8x128xf32>
    %19 = arith.addf %16, %18 : vector<8x128xf32>
    %cst = arith.constant 0.000000e+00 : f32
    %20 = vector.broadcast %cst : f32 to vector<8x128xf32>
    %21 = arith.maximumf %19, %20 : vector<8x128xf32>
    %c0_13 = arith.constant 0 : index
    %c0_14 = arith.constant 0 : index
    %c0_15 = arith.constant 0 : index
    %22 = vector.load %arg5[%c0_13, %c0_14, %c0_15] : memref<2x8x128xf32, #tpu.memory_space<vmem>>, vector<1x8x128xf32>
    %23 = vector.shape_cast %22 : vector<1x8x128xf32> to vector<8x128xf32>
    %24 = vector.shape_cast %21 : vector<8x128xf32> to vector<1x8x128xf32>
    tpu.vector_store %arg5[%c0_13, %c0_14, %c0_15], %24 {strides = array<i32>} : memref<2x8x128xf32, #tpu.memory_space<vmem>>, vector<1x8x128xf32>,
    %c1_16 = arith.constant 1 : index
    %c0_17 = arith.constant 0 : index
    %25 = memref.load %arg3[%c1_16, %c0_17] : memref<2x3xf32, #tpu.memory_space<smem>>
    %26 = vector.broadcast %25 : f32 to vector<8x128xf32>
    %27 = arith.mulf %1, %26 : vector<8x128xf32>
    %c1_18 = arith.constant 1 : index
    %c1_19 = arith.constant 1 : index
    %28 = memref.load %arg3[%c1_18, %c1_19] : memref<2x3xf32, #tpu.memory_space<smem>>
    %29 = vector.broadcast %28 : f32 to vector<8x128xf32>
    %30 = arith.mulf %3, %29 : vector<8x128xf32>
    %31 = arith.addf %27, %30 : vector<8x128xf32>
    %c1_20 = arith.constant 1 : index
    %c2_21 = arith.constant 2 : index
    %32 = memref.load %arg3[%c1_20, %c2_21] : memref<2x3xf32, #tpu.memory_space<smem>>
    %33 = vector.broadcast %32 : f32 to vector<8x128xf32>
    %34 = arith.mulf %5, %33 : vector<8x128xf32>
    %35 = arith.addf %31, %34 : vector<8x128xf32>
    %c1_22 = arith.constant 1 : index
    %36 = memref.load %arg4[%c1_22] : memref<2xf32, #tpu.memory_space<smem>>
    %37 = vector.broadcast %36 : f32 to vector<8x128xf32>
    %38 = arith.addf %35, %37 : vector<8x128xf32>
    %cst_23 = arith.constant 0.000000e+00 : f32
    %39 = vector.broadcast %cst_23 : f32 to vector<8x128xf32>
    %40 = arith.maximumf %38, %39 : vector<8x128xf32>
    %c1_24 = arith.constant 1 : index
    %c0_25 = arith.constant 0 : index
    %c0_26 = arith.constant 0 : index
    %41 = vector.load %arg5[%c1_24, %c0_25, %c0_26] : memref<2x8x128xf32, #tpu.memory_space<vmem>>, vector<1x8x128xf32>
    %42 = vector.shape_cast %41 : vector<1x8x128xf32> to vector<8x128xf32>
    %43 = vector.shape_cast %40 : vector<8x128xf32> to vector<1x8x128xf32>
    tpu.vector_store %arg5[%c1_24, %c0_25, %c0_26], %43 {strides = array<i32>} : memref<2x8x128xf32, #tpu.memory_space<vmem>>, vector<1x8x128xf32>,
    return
  }
  func.func @transform_0(%arg0: i32) -> i32 {
    %c0_i32 = arith.constant 0 : i32
    %c0_i32_0 = arith.constant 0 : i32
    return %c0_i32 : i32
  }
  func.func @transform_1(%arg0: i32) -> (i32, i32, i32) {
    %c0_i32 = arith.constant 0 : i32
    %c0_i32_0 = arith.constant 0 : i32
    %c0_i32_1 = arith.constant 0 : i32
    return %c0_i32, %arg0, %c0_i32_0 : i32, i32, i32
  }
  func.func @transform_2(%arg0: i32) -> (i32, i32) {
    %c0_i32 = arith.constant 0 : i32
    %c0_i32_0 = arith.constant 0 : i32
    %c0_i32_1 = arith.constant 0 : i32
    return %c0_i32, %c0_i32_0 : i32, i32
  }
  func.func @transform_3(%arg0: i32) -> i32 {
    %c0_i32 = arith.constant 0 : i32
    %c0_i32_0 = arith.constant 0 : i32
    return %c0_i32 : i32
  }
  func.func @transform_4(%arg0: i32) -> (i32, i32, i32) {
    %c0_i32 = arith.constant 0 : i32
    %c0_i32_0 = arith.constant 0 : i32
    %c0_i32_1 = arith.constant 0 : i32
    return %c0_i32, %arg0, %c0_i32_0 : i32, i32, i32
  }
}

</mosaic_0001>

<bundles_post_ra>
// kernel: linear1_dropout_relu.1
= control target key start
LH: loop header
LB: loop body
LE: loop exit
PB: predicated region body
PF: predicated region fallthrough
CT: control target
= control target key end

     0   :  { %10 = vsyncpa [#allocation4], 0  ;;  %s174_s0 = inlined_call_operand.<no memory space> [shape: u32[1], index: 0, kind: input, shape index: {}]   ;;  %s175_s1 = inlined_call_operand.vmem [shape: f32[3,8,128], index: 1, kind: input, shape index: {}]   ;;  %s176_s2 = inlined_call_operand.vmem [shape: f32[2,3], index: 2, kind: input, shape index: {}]   ;;  %s177_s3 = inlined_call_operand.vmem [shape: f32[2], index: 3, kind: input, shape index: {}]   ;;  %s178_s4 = inlined_call_operand.vmem [shape: f32[2,8,128], index: 4, kind: output, shape index: {}]  }
   0x1   :  { %s21_s17 = sshll.u32 %s176_s2, 4  ;;  %s22_s17 = int_to_ptr.vmem [resolvable:$true] %s21_s17 }
   0x2   :  { %11 = vsyncpa [#allocation6], 0  ;;  %s30_s19 = sshll.u32 %s177_s3, 4  ;;  %s126_s20 = smov [#allocation3]   ;;  %s31_s19 = int_to_ptr.vmem [resolvable:$true] %s30_s19 }
   0x3   :  { %24 = dma.vmem_to_smem %s22_s17, 32, %s126_s20, [#allocation4]  }
   0x4   :  { %s127_s21 = smov [#allocation5]  }
   0x5   :  { %33 = dma.vmem_to_smem %s31_s19, 16, %s127_s21, [#allocation6]  }
   0x6   :  { %122 = dma.done.wait [#allocation4], 32  }
   0x7   :  { %123 = vsyncadd [#allocation4], 4294967264 }
   0x8   :  { %124 = dma.done.wait [#allocation6], 16  }
   0x9   :  { %125 = vsyncadd [#allocation6], 4294967280 }
   0xa   :  { %42 = sfence }
   0xb   :  { %s48_s22 = sld [smem:[#allocation3]]  ;;  %v43_v0 = vld [vmem:[%s175_s1] sm:$0xff]  ;;  %v87_v1 = vld [vmem:[%s175_s1 + $0x8] sm:$0xff]  ;;  %v88_v2 = vld [vmem:[%s175_s1 + $0x10] sm:$0xff] }
   0xc   :  { %s89_s23 = sld [smem:[#allocation3 + $0x1]] }
   0xd   :  { %s90_s24 = sld [smem:[#allocation3 + $0x2]] }
   0xe   :  { %s59_s2 = sld [smem:[#allocation5]] }
   0xf   :  { %s91_s27 = sld [smem:[#allocation3 + $0x80]] }
  0x10   :  { %s92_s29 = sld [smem:[#allocation3 + $0x81]] }
  0x11   :  { %v49_v3 = vstv %s48_s22  ;;  %s93_s6 = sld [smem:[#allocation3 + $0x82]] }
  0x12   :  { %v50_v4 = vmul.f32 %v49_v3, %v43_v0  ;;  %v52_v5 = vstv %s89_s23  ;;  %s94_s7 = sld [smem:[#allocation5 + $0x1]] }
  0x13   :  { %v53_v6 = vmul.f32 %v87_v1, %v52_v5  ;;  %v56_v7 = vstv %s90_s24 }
  0x14   :  { %v57_v8 = vmul.f32 %v88_v2, %v56_v7  ;;  %v60_v11 = vstv %s59_s2 }
  0x15   :  { %v54_v9 = vadd.f32 %v53_v6, %v50_v4  ;;  %v65_v10 = vstv %s91_s27 }
  0x16   :  { %v66_v12 = vmul.f32 %v65_v10, %v43_v0  ;;  %v68_v13 = vstv %s92_s29 }
  0x17   :  { %v58_v14 = vadd.f32 %v57_v8, %v54_v9  ;;  %v69_v15 = vmul.f32 %v87_v1, %v68_v13  ;;  %v72_v16 = vstv %s93_s6 }
  0x18   :  { %v73_v17 = vmul.f32 %v88_v2, %v72_v16  ;;  %v76_v20 = vstv %s94_s7 }
  0x19   :  { %v61_v18 = vadd.f32 %v60_v11, %v58_v14  ;;  %v70_v19 = vadd.f32 %v69_v15, %v66_v12 }
  0x1b   :  { %v62_v21 = vmax.f32 %v61_v18, 0.0  ;;  %v74_v22 = vadd.f32 %v73_v17, %v70_v19 }
  0x1d   :  { %63 = vst [vmem:[%s178_s4] sm:$0xff] %v62_v21  ;;  %v77_v23 = vadd.f32 %v76_v20, %v74_v22 }
  0x1f   :  { %v78_v24 = vmax.f32 %v77_v23, 0.0 }
  0x21   :  { %95 = vst [vmem:[%s178_s4 + $0x8] sm:$0xff] %v78_v24 }
  0x22   :  { %85 = vsyncpa [#allocation4], 1 }
  0x23   :  { %86 = vsyncpa [#allocation6], 1 }

</bundles_post_ra>
